<compile_context>
chip_gen: v5e
topology: v5e:2x2
jax: 0.10.0
libtpu: 0.0.40
codegen_flags: <defaults>
</compile_context>

<pallas_src>
import functools
import numpy as np
import jax
import jax.numpy as jnp
from jax.experimental import pallas as pl
from jax.experimental.pallas import tpu as pltpu


def _round_up(x, m):
    return ((x + m - 1) // m) * m


# ---------------------------------------------------------------------------
# Deterministic parameter construction (mirrors STFT.__init__ / MelSpectrogram.__init__)
# ---------------------------------------------------------------------------
def _hann_window(win_length):
    # scipy.signal.get_window('hann', N, fftbins=True) == periodic Hann
    n = np.arange(win_length)
    return 0.5 - 0.5 * np.cos(2.0 * np.pi * n / win_length)


def _stft_bases(filter_length, win_length):
    fourier_basis = np.fft.fft(np.eye(filter_length))
    cutoff = int(filter_length / 2 + 1)
    real_b = np.real(fourier_basis[:cutoff, :])   # (cutoff, fl)
    imag_b = np.imag(fourier_basis[:cutoff, :])   # (cutoff, fl)
    win = _hann_window(win_length)
    pad = (filter_length - win_length) // 2       # pad_center(win, filter_length)
    win = np.pad(win, (pad, filter_length - win_length - pad))
    real_b = real_b * win[None, :]
    imag_b = imag_b * win[None, :]
    # transpose so the kernel can do frames @ basis
    return (real_b.T.astype(np.float32),          # (fl, cutoff)
            imag_b.T.astype(np.float32))          # (fl, cutoff)


def _hz_to_mel_htk(f):
    return 2595.0 * np.log10(1.0 + f / 700.0)


def _mel_to_hz_htk(m):
    return 700.0 * (10.0 ** (m / 2595.0) - 1.0)


def _mel_filterbank(sr, n_fft, n_mels, fmin, fmax):
    # librosa.filters.mel(sr, n_fft, n_mels, fmin, fmax, htk=True) with Slaney norm
    if fmax is None:
        fmax = sr / 2.0
    cutoff = n_fft // 2 + 1
    fftfreqs = np.linspace(0.0, sr / 2.0, cutoff)
    mel_pts = np.linspace(_hz_to_mel_htk(fmin), _hz_to_mel_htk(fmax), n_mels + 2)
    mel_f = _mel_to_hz_htk(mel_pts)
    fdiff = np.diff(mel_f)
    ramps = mel_f[:, None] - fftfreqs[None, :]
    lower = -ramps[:-2] / fdiff[:-1, None]
    upper = ramps[2:] / fdiff[1:, None]
    weights = np.maximum(0.0, np.minimum(lower, upper))
    enorm = 2.0 / (mel_f[2:n_mels + 2] - mel_f[:n_mels])
    weights = weights * enorm[:, None]
    return weights.astype(np.float32)             # (n_mels, cutoff)


# ---------------------------------------------------------------------------
# Pallas kernel: per (batch, frame-tile)  frames -> |STFT| -> mel -> log(clamp)
# ---------------------------------------------------------------------------
def _mel_kernel(frames_ref, basis_ref, melT_ref, out_ref, *, cutoff_pad):
    f = frames_ref[0]                                               # (TF, fl) bf16
    # one wide bf16 MXU matmul against [real | imag] bases, f32 accumulation
    ri = jnp.dot(f, basis_ref[...],
                 preferred_element_type=jnp.float32)                # (TF, 2*cutoff_pad) f32
    real = ri[:, :cutoff_pad]                                       # lane-aligned slices
    imag = ri[:, cutoff_pad:]
    mag = jnp.sqrt(real * real + imag * imag)                       # f32 (TF, cutoff_pad)
    mel = jnp.dot(mag.astype(jnp.bfloat16), melT_ref[...],
                  preferred_element_type=jnp.float32)               # (TF, n_mels_pad) f32
    out_ref[0] = jnp.log(jnp.maximum(mel, 1e-5))


def mel_spectrogram(y, *, n_mels, sample_rate, filter_length, hop_length,
                    win_length=None, mel_fmin=0.0, mel_fmax=None):
    """y: (B, T) float32 in [-1, 1].  Returns (B, n_mels, n_frames) float32."""
    if win_length is None:
        win_length = filter_length
    B, T = y.shape
    cutoff = int(filter_length / 2 + 1)
    cutoff_pad = _round_up(cutoff, 128)
    n_mels_pad = _round_up(n_mels, 128)

    # parameters (buffers of the torch module), zero-padded to lane multiples, bf16
    real_b, imag_b = _stft_bases(filter_length, win_length)         # (fl, cutoff) each
    basis = np.zeros((filter_length, 2 * cutoff_pad), np.float32)
    basis[:, :cutoff] = real_b
    basis[:, cutoff_pad:cutoff_pad + cutoff] = imag_b
    mel_basis = _mel_filterbank(sample_rate, filter_length, n_mels, mel_fmin, mel_fmax)
    mel_T = np.zeros((cutoff_pad, n_mels_pad), np.float32)
    mel_T[:cutoff, :n_mels] = mel_basis.T

    # glue: reflect pad + frame extraction (matches F.pad(..., 'reflect') + strided conv1d)
    pad = filter_length // 2
    y_pad = jnp.pad(y, ((0, 0), (pad, pad)), mode="reflect")        # (B, T + fl)
    n_frames = (T + 2 * pad - filter_length) // hop_length + 1
    # TODO(synk): stream frames directly from y_pad inside the kernel (pl.ds strided reads
    # on a pl.ANY ref) to avoid materializing the ~fl/hop-x larger frames tensor in HBM.
    starts = np.arange(n_frames) * hop_length
    idx = starts[:, None] + np.arange(filter_length)[None, :]       # (n_frames, fl)
    frames = y_pad[:, idx]                                          # (B, n_frames, fl)

    # frame-axis tiling (bounded VMEM, second parallel grid axis)
    TF = min(256, _round_up(n_frames, 8))
    n_frames_pad = _round_up(n_frames, TF)
    frames = jnp.pad(frames, ((0, 0), (0, n_frames_pad - n_frames), (0, 0)))
    frames = frames.astype(jnp.bfloat16)

    kernel = functools.partial(_mel_kernel, cutoff_pad=cutoff_pad)
    out = pl.pallas_call(
        kernel,
        out_shape=jax.ShapeDtypeStruct((B, n_frames_pad, n_mels_pad), jnp.float32),
        grid_spec=pltpu.PrefetchScalarGridSpec(
            num_scalar_prefetch=0,
            grid=(B, n_frames_pad // TF),
            in_specs=[
                pl.BlockSpec((1, TF, filter_length), lambda b, t: (b, t, 0)),
                pl.BlockSpec((filter_length, 2 * cutoff_pad), lambda b, t: (0, 0)),
                pl.BlockSpec((cutoff_pad, n_mels_pad), lambda b, t: (0, 0)),
            ],
            out_specs=pl.BlockSpec((1, TF, n_mels_pad), lambda b, t: (b, t, 0)),
        ),
        compiler_params=pltpu.CompilerParams(
            dimension_semantics=("parallel", "parallel")),
    )(frames,
      jnp.asarray(basis, dtype=jnp.bfloat16),
      jnp.asarray(mel_T, dtype=jnp.bfloat16))

    out = out[:, :n_frames, :n_mels]                                # drop padding
    # match PyTorch return layout: (B, n_mels, n_frames)
    return jnp.transpose(out, (0, 2, 1))


# ---------------------------------------------------------------------------
# Pure-JAX references (same math) for sanity checks
# ---------------------------------------------------------------------------
def _reference(y, *, n_mels, sample_rate, filter_length, hop_length, quantize_bf16):
    real_b, imag_b = _stft_bases(filter_length, filter_length)
    mel_basis = _mel_filterbank(sample_rate, filter_length, n_mels, 0.0, None)
    pad = filter_length // 2
    y_pad = jnp.pad(y, ((0, 0), (pad, pad)), mode="reflect")
    T = y.shape[1]
    n_frames = (T + 2 * pad - filter_length) // hop_length + 1
    idx = (np.arange(n_frames) * hop_length)[:, None] + np.arange(filter_length)[None, :]
    frames = y_pad[:, idx]                                          # (B, n_frames, fl)
    rb, ib, mT = jnp.asarray(real_b), jnp.asarray(imag_b), jnp.asarray(mel_basis.T)
    if quantize_bf16:
        q = lambda a: a.astype(jnp.bfloat16).astype(jnp.float32)
        frames, rb, ib, mT = q(frames), q(rb), q(ib), q(mT)
    real = jnp.einsum("bnf,fc->bnc", frames, rb)
    imag = jnp.einsum("bnf,fc->bnc", frames, ib)
    mag = jnp.sqrt(real ** 2 + imag ** 2)                           # (B, n_frames, cutoff)
    if quantize_bf16:
        mag = mag.astype(jnp.bfloat16).astype(jnp.float32)
    mel = jnp.einsum("bnc,cm->bnm", mag, mT)                        # (B, n_frames, n_mels)
    out = jnp.log(jnp.maximum(mel, 1e-5))
    return jnp.transpose(out, (0, 2, 1))                            # (B, n_mels, n_frames)


if __name__ == "__main__":
    key = jax.random.PRNGKey(0)
    B, T = 2, 256
    filter_length = 64
    hop_length = 16
    n_mels = 32
    sample_rate = 16000

    y = jax.random.uniform(key, (B, T), dtype=jnp.float32, minval=-1.0, maxval=1.0)

    out = jax.block_until_ready(mel_spectrogram(
        y, n_mels=n_mels, sample_rate=sample_rate,
        filter_length=filter_length, hop_length=hop_length))

    ref_bf16 = jax.block_until_ready(_reference(
        y, n_mels=n_mels, sample_rate=sample_rate,
        filter_length=filter_length, hop_length=hop_length, quantize_bf16=True))
    ref_f32 = jax.block_until_ready(_reference(
        y, n_mels=n_mels, sample_rate=sample_rate,
        filter_length=filter_length, hop_length=hop_length, quantize_bf16=False))

    n_frames = T // hop_length + 1
    assert out.shape == (B, n_mels, n_frames), out.shape
    # structural check: kernel vs. identically bf16-quantized reference (tight tol)
    assert jnp.allclose(out, ref_bf16, atol=2e-3, rtol=2e-3), \
        float(jnp.max(jnp.abs(out - ref_bf16)))
    # algorithmic check: kernel (bf16 matmuls) vs. full-f32 reference (loose tol on log-mel)
    assert jnp.allclose(out, ref_f32, atol=5e-1, rtol=0.0), \
        float(jnp.max(jnp.abs(out - ref_f32)))

    print("KERNEL_OK")
</pallas_src>

<mosaic_0001>
module attributes {stable_mosaic.version = 11 : i64} {
  func.func @_mel_kernel(%arg0: i32, %arg1: i32, %arg2: memref<1x24x64xbf16, #tpu.memory_space<vmem>>, %arg3: memref<64x256xbf16, #tpu.memory_space<vmem>>, %arg4: memref<128x128xbf16, #tpu.memory_space<vmem>>, %arg5: memref<1x24x128xf32, #tpu.memory_space<vmem>>) attributes {dimension_semantics = [#tpu.dimension_semantics<parallel>, #tpu.dimension_semantics<parallel>], iteration_bounds = array<i64: 2, 1>, scalar_prefetch = 0 : i64, scratch_operands = 0 : i64, tpu.core_type = #tpu.core_type<tc>, window_params = [{transform_indices = @transform_0, window_bounds = array<i64: 1, 24, 64>}, {pipeline_mode = #tpu.pipeline_mode<synchronous>, transform_indices = @transform_1, window_bounds = array<i64: 64, 256>}, {pipeline_mode = #tpu.pipeline_mode<synchronous>, transform_indices = @transform_2, window_bounds = array<i64: 128, 128>}, {transform_indices = @transform_3, window_bounds = array<i64: 1, 24, 128>}]} {
    %c0 = arith.constant 0 : index
    %c0_0 = arith.constant 0 : index
    %c0_1 = arith.constant 0 : index
    %0 = vector.load %arg2[%c0, %c0_0, %c0_1] : memref<1x24x64xbf16, #tpu.memory_space<vmem>>, vector<1x24x64xbf16>
    %1 = vector.shape_cast %0 : vector<1x24x64xbf16> to vector<24x64xbf16>
    %c0_2 = arith.constant 0 : index
    %c0_3 = arith.constant 0 : index
    %2 = vector.load %arg3[%c0_2, %c0_3] : memref<64x256xbf16, #tpu.memory_space<vmem>>, vector<64x256xbf16>
    %cst = arith.constant dense<0.000000e+00> : vector<24x256xf32>
    %3 = tpu.matmul %1, %2, %cst {dimension_numbers = #tpu.dot_dimension_numbers<[1], [0], [0], [1], [0, 0, 1, 1], [], []>} : vector<24x64xbf16>, vector<64x256xbf16>, vector<24x256xf32> -> vector<24x256xf32>
    %4 = vector.extract_strided_slice %3 {offsets = [0, 0], sizes = [24, 128], strides = [1, 1]} : vector<24x256xf32> to vector<24x128xf32>
    %5 = vector.extract_strided_slice %3 {offsets = [0, 128], sizes = [24, 128], strides = [1, 1]} : vector<24x256xf32> to vector<24x128xf32>
    %6 = arith.mulf %4, %4 : vector<24x128xf32>
    %7 = arith.mulf %5, %5 : vector<24x128xf32>
    %8 = arith.addf %6, %7 : vector<24x128xf32>
    %9 = math.sqrt %8 : vector<24x128xf32>
    %10 = arith.truncf %9 : vector<24x128xf32> to vector<24x128xbf16>
    %c0_4 = arith.constant 0 : index
    %c0_5 = arith.constant 0 : index
    %11 = vector.load %arg4[%c0_4, %c0_5] : memref<128x128xbf16, #tpu.memory_space<vmem>>, vector<128x128xbf16>
    %cst_6 = arith.constant dense<0.000000e+00> : vector<24x128xf32>
    %12 = tpu.matmul %10, %11, %cst_6 {dimension_numbers = #tpu.dot_dimension_numbers<[1], [0], [0], [1], [0, 0, 1, 1], [], []>} : vector<24x128xbf16>, vector<128x128xbf16>, vector<24x128xf32> -> vector<24x128xf32>
    %cst_7 = arith.constant 9.99999974E-6 : f32
    %13 = vector.broadcast %cst_7 : f32 to vector<24x128xf32>
    %14 = arith.maximumf %12, %13 : vector<24x128xf32>
    %15 = math.log %14 : vector<24x128xf32>
    %c0_8 = arith.constant 0 : index
    %c0_9 = arith.constant 0 : index
    %c0_10 = arith.constant 0 : index
    %16 = vector.load %arg5[%c0_8, %c0_9, %c0_10] : memref<1x24x128xf32, #tpu.memory_space<vmem>>, vector<1x24x128xf32>
    %17 = vector.shape_cast %16 : vector<1x24x128xf32> to vector<24x128xf32>
    %18 = vector.shape_cast %15 : vector<24x128xf32> to vector<1x24x128xf32>
    tpu.vector_store %arg5[%c0_8, %c0_9, %c0_10], %18 {strides = array<i32>} : memref<1x24x128xf32, #tpu.memory_space<vmem>>, vector<1x24x128xf32>,
    return
  }
  func.func @transform_0(%arg0: i32, %arg1: i32) -> (i32, i32, i32) {
    %c0_i32 = arith.constant 0 : i32
    %c0_i32_0 = arith.constant 0 : i32
    return %arg0, %arg1, %c0_i32 : i32, i32, i32
  }
  func.func @transform_1(%arg0: i32, %arg1: i32) -> (i32, i32) {
    %c0_i32 = arith.constant 0 : i32
    %c0_i32_0 = arith.constant 0 : i32
    %c0_i32_1 = arith.constant 0 : i32
    return %c0_i32, %c0_i32_0 : i32, i32
  }
  func.func @transform_2(%arg0: i32, %arg1: i32) -> (i32, i32) {
    %c0_i32 = arith.constant 0 : i32
    %c0_i32_0 = arith.constant 0 : i32
    %c0_i32_1 = arith.constant 0 : i32
    return %c0_i32, %c0_i32_0 : i32, i32
  }
  func.func @transform_3(%arg0: i32, %arg1: i32) -> (i32, i32, i32) {
    %c0_i32 = arith.constant 0 : i32
    %c0_i32_0 = arith.constant 0 : i32
    return %arg0, %arg1, %c0_i32 : i32, i32, i32
  }
}

</mosaic_0001>

<bundles_post_ra>
// kernel: tpu_custom_call.1
= control target key start
LH: loop header
LB: loop body
LE: loop exit
PB: predicated region body
PF: predicated region fallthrough
CT: control target
= control target key end

     0   :  { %8 = vsyncpa [#allocation3], 0  ;;  %s1191_s0 = inlined_call_operand.hbm [shape: bf16[2,24,64], index: 0, kind: input, shape index: {}]   ;;  %s1192_s1 = inlined_call_operand.hbm [shape: bf16[64,256], index: 1, kind: input, shape index: {}]   ;;  %s1193_s2 = inlined_call_operand.hbm [shape: bf16[128,128], index: 2, kind: input, shape index: {}]   ;;  %s1194_s3 = inlined_call_operand.hbm [shape: f32[2,24,128], index: 3, kind: output, shape index: {}]  }
   0x1   :  { %10 = vsyncpa [#allocation3 + $0x1], 0 }
   0x2   :  { %11 = vsyncpa [#allocation6], 0 }
   0x3   :  { %12 = vsyncpa [#allocation4], 0 }
   0x4   :  { %14 = vsyncpa [#allocation4 + $0x1], 0  ;;  %s1034_s12 = smov 0   ;;  %s1036_s13 = smov 0  }
   0x5   :  { %s1038_s14 = smov 0   ;;  %s1040_s15 = smov 0  }
   0x6   :  { %s1042_s16 = smov 0   ;;  %s1044_s17 = smov 0  }
   0x7 LB: > { %s612_s18 = sadd.s32 4294967295, %s1004_s17   ;;  %s613_s19 = sadd.s32 4294967294, %s1004_s17   ;;  %s1004_s17 = sphi %s1044_s17, %s20_s17   ;;  %s1000_s16 = sphi %s1042_s16, %s1205_s16   ;;  %s996_s15 = sphi %s1040_s15, %s1204_s15   ;;  %s992_s14 = sphi %s1038_s14, %s1203_s14   ;;  %s988_s13 = sphi %s1036_s13, %s1202_s13   ;;  %s984_s12 = sphi %s1034_s12, %s1201_s12  }
   0x8   : > { %p54_p0 = scmp.ne.s32.totalorder %s988_s13, %s984_s12  ;;  %p1068_p1 = scmp.eq.s32.totalorder %s612_s18, 0 }
   0x9   : > { %p1072_p2 = scmp.eq.s32.totalorder %s612_s18, 1  ;;  %p128_p3 = scmp.eq.s32.totalorder %s613_s19, 1 }
   0xa   : > { %p1078_p4 = por %p1068_p1, %p54_p0  ;;  %p614_p5 = scmp.ge.s32.totalorder %s1004_s17, 1 }
   0xb   : > { %p1083_p6 = por %p128_p3, %p54_p0  ;;  %p135_p7 = scmp.lt.s32.totalorder %s1004_s17, 3 }
   0xc   : > { %s146_s26 = sshll.u32 %s1192_s1, 4  ;;  %s1006_s28 = smov [#allocation5]   ;;  %s147_s26 = int_to_ptr.hbm [resolvable:$true] %s146_s26 }
   0xd   : > { %p1091_p8 = pnand %p614_p5, %p135_p7  ;;  %s148_s29 = sshll.u32 %s1006_s28, 4  ;;  %s149_s29 = int_to_ptr.vmem [resolvable:$true] %s148_s29 }
   0xe   : > { %p617_p11 = scmp.ge.s32.totalorder %s1004_s17, 2  ;;  %s160_s5 = sshll.u32 %s1193_s2, 4  ;;  %s161_s5 = int_to_ptr.hbm [resolvable:$true] %s160_s5 }
   0xf   : > { %p739_p9 = pneg %p1091_p8  ;;  %s1007_s6 = smov 128  }
  0x10   : > { %s1008_s7 = smov 8   ;;  %s1009_s8 = smov [#allocation7]  }
  0x11   : > { %p740_p10 = pnand %p739_p9, %p1068_p1  ;;  %s162_s9 = sshll.u32 %s1009_s8, 4  ;;  %s163_s9 = int_to_ptr.vmem [resolvable:$true] %s162_s9 }
  0x12   : > { %s1010_s10 = smov 64   ;;  %s1011_s11 = smov 4  }
  0x13   : > { %742 = dma.hbm_to_vmem [thread:$0]  (!%p740_p10), %s147_s26, 1024, %s149_s29, [#allocation6], %s1007_s6, %s1007_s6, %s1008_s7  }
  0x14   : > { %745 = dma.hbm_to_vmem [thread:$0]  (!%p740_p10), %s161_s5, 1024, %s163_s9, [#allocation6], %s1010_s10, %s1010_s10, %s1011_s11  }
  0x15   : > { %s32_s18 = sadd.s32 1, %s1000_s16  ;;  %s41_s19 = sadd.s32 1, %s992_s14 }
  0x16   : > { %p34_p12 = scmp.ge.s32.totalorder %s32_s18, 2  ;;  %p48_p13 = scmp.ne.s32.totalorder %s992_s14, %s988_s13 }
  0x17   : > { %p49_p0 = scmp.eq.s32.totalorder %s1004_s17, 0  ;;  %p756_p3 = scmp.lt.s32.totalorder %s1004_s17, 2 }
  0x18   : > { %s1207_s18 = smov (%p34_p12, %s32_s18), 0  ;;  %p1116_p7 = por %p1072_p2, %p48_p13 }
  0x19   : > { %p50_p5 = por %p49_p0, %p48_p13  ;;  %s36_s25 = ssub.s32 %s1000_s16, %s1207_s18 }
  0x1a   : > { %s176_s26 = sand.u32 1, %s992_s14   ;;  %p39_p9 = scmp.eq.s32.totalorder %s36_s25, 0 }
  0x1b   : > { %s722_s28 = smul.u32 12, %s176_s26  ;;  %p747_p10 = pnand %p756_p3, %p50_p5 }
  0x1c   : > { %s1124_s29 = scalar_select %p39_p9, %s992_s14, %s41_s19  }
  0x1d   : > { %s723_s30 = smul.u32 12, %s1000_s16  ;;  %s180_s4 = scalar_lea.vmem [#allocation2], %s722_s28 }
  0x1e   : > { %s190_s5 = sshll.u32 %s180_s4, 4  ;;  %s177_s9 = scalar_lea.sflag [#allocation3], %s176_s26  ;;  %s191_s5 = int_to_ptr.vmem [resolvable:$true] %s190_s5 }
  0x1f   : > { %s187_s8 = scalar_lea.hbm %s1191_s0, %s723_s30  ;;  %202 = sbr.rel (%p1091_p8) target bundleno = 376 (0x178), region = 32 }
  0x20   : > { %s188_s21 = sshll.u32 %s187_s8, 4  ;;  %s1136_s19 = sand.u32 (!%p1091_p8), 1, %s988_s13   ;;  %s189_s21 = int_to_ptr.hbm [resolvable:$true] %s188_s21 }
  0x21   : > { %749 = dma.hbm_to_vmem [thread:$0]  (!%p747_p10), %s189_s21, 192, %s191_s5, %s177_s9, %s1010_s10, %s1010_s10, %s1011_s11  }
  0x22   : > { %s724_s25 = smul.u32 (!%p1091_p8), 12, %s1136_s19  ;;  %s205_s28 = scalar_lea.sflag (!%p1091_p8), [#allocation3], %s1136_s19 }
  0x24   : > { %s1140_s30 = scalar_lea.vmem [#allocation2], %s724_s25 }
  0x25   : > { %971 = dma.done.wait (%p1078_p4), %s205_s28, 192  }
  0x26   : > { %973 = vsyncadd (%p1078_p4), %s205_s28, 4294967104 }
  0x27   : > { %975 = dma.done.wait (%p1068_p1), [#allocation6], 2048  }
  0x28   : > { %977 = vsyncadd (%p1068_p1), [#allocation6], 4294965248  ;;  %v652_v0 = vld [vmem:[#allocation5 + $0x30] sm:$0xf]  ;;  %v705_v1 = vld [vmem:[#allocation5 + $0x34] sm:$0xf0] }
  0x29   : > { %v704_v2 = vld [vmem:[#allocation5 + $0x34] sm:$0xf]  ;;  %v653_v3 = vor.u32 %v705_v1, %v652_v0  ;;  %v654_v4 = vld [vmem:[#allocation5 + $0x38] sm:$0xf0]  ;;  %v644_v5 = vld [vmem:[#allocation5 + $0x20] sm:$0xf] }
  0x2a   : > { %v703_v6 = vld [vmem:[#allocation5 + $0x24] sm:$0xf0]  ;;  %v657_v7 = vor.u32 %v704_v2, %v654_v4  ;;  %v702_v8 = vld [vmem:[#allocation5 + $0x24] sm:$0xf]  ;;  %v646_v9 = vld [vmem:[#allocation5 + $0x28] sm:$0xf0] }
  0x2b   : > { %315 = vmatpush.bf16.msra.mxu0 %v653_v3  ;;  %v645_v10 = vor.u32 %v703_v6, %v644_v5  ;;  %v649_v11 = vor.u32 %v702_v8, %v646_v9  ;;  %v636_v12 = vld [vmem:[#allocation5 + $0x10] sm:$0xf]  ;;  %v701_v13 = vld [vmem:[#allocation5 + $0x14] sm:$0xf0]  ;;  %v700_v14 = vld [vmem:[#allocation5 + $0x14] sm:$0xf] }
  0x2c   : > { %333 = vmatpush.bf16.msra.mxu1 %v657_v7  ;;  %v638_v15 = vld [vmem:[#allocation5 + $0x18] sm:$0xf0]  ;;  %v637_v16 = vor.u32 %v701_v13, %v636_v12  ;;  %v628_v18 = vld [vmem:[#allocation5] sm:$0xf]  ;;  %v699_v19 = vld [vmem:[#allocation5 + $0x4] sm:$0xf0] }
  0x2d   : > { %v641_v17 = vor.u32 %v700_v14, %v638_v15  ;;  %v698_v20 = vld [vmem:[#allocation5 + $0x4] sm:$0xf]  ;;  %v630_v21 = vld [vmem:[#allocation5 + $0x8] sm:$0xf0]  ;;  %v629_v22 = vor.u32 %v699_v19, %v628_v18  ;;  %vm304_vm0 = vcmask 523264   ;;  %v713_v28 = vld [vmem:[#allocation7 + $0x38] sm:$0xff] }
  0x2e   : > { %v633_v23 = vor.u32 %v698_v20, %v630_v21  ;;  %v697_v24 = vld [vmem:[%s1140_s30] sm:$0xff]  ;;  %v247_v25 = vld [vmem:[%s1140_s30 + $0x8] sm:$0xf]  ;;  %458 = vmatpush.bf16.msra.mxu2 %v713_v28  ;;  %714 = vmatpush.bf16.msra.mxu3 %v713_v28  ;;  %v710_v31 = vld [vmem:[#allocation7 + $0x20] sm:$0xff]  ;;  %s725_s20 = smul.u32 24, %s1136_s19  ;;  %s938_s9 = scalar_lea.hbm %s1194_s3, 48 }
  0x2f   : > { %316 = vmatpush.bf16.msra.mxu0 %v645_v10  ;;  %v261_v26 = vunpack.c.l.b16 %v247_v25  ;;  %v712_v29 = vld [vmem:[#allocation7 + $0x30] sm:$0xff]  ;;  %v711_v30 = vld [vmem:[#allocation7 + $0x28] sm:$0xff]  ;;  %v709_v32 = vld [vmem:[#allocation7 + $0x18] sm:$0xff]  ;;  %s726_s22 = smul.u32 24, %s996_s15  ;;  %s489_s15 = scalar_lea.sflag [#allocation4], %s1136_s19 }
  0x30   : > { %334 = vmatpush.bf16.msra.mxu1 %v649_v11  ;;  %v708_v33 = vld [vmem:[#allocation7 + $0x10] sm:$0xff]  ;;  %v707_v34 = vld [vmem:[#allocation7 + $0x8] sm:$0xff]  ;;  %v706_v35 = vld [vmem:[#allocation7] sm:$0xff]  ;;  %s241_s27 = scalar_lea.vmem [#allocation8], %s725_s20 }
  0x31   : > { %v263_v27 = vpack.c.b16 %v261_v26, %v261_v26  ;;  %s502_s26 = scalar_lea.hbm %s1194_s3, %s726_s22  ;;  %s503_s4 = sshll.u32 %s241_s27, 4  ;;  %s504_s4 = int_to_ptr.vmem [resolvable:$true] %s503_s4 }
  0x32   : > { %459 = vmatpush.bf16.msra.mxu2 %v712_v29  ;;  %715 = vmatpush.bf16.msra.mxu3 %v712_v29  ;;  %s505_s5 = sshll.u32 %s502_s26, 4  ;;  %s506_s5 = int_to_ptr.hbm [resolvable:$true] %s505_s5 }
  0x33   : > { %317 = vmatpush.bf16.msra.mxu0 %v637_v16  ;;  %s932_s6 = sshra.s32 %s506_s5, 4  ;;  %s933_s6 = int_to_ptr.hbm [resolvable:$true] %s932_s6 }
  0x34   : > { %335 = vmatpush.bf16.msra.mxu1 %v641_v17  ;;  %s934_s7 = scalar_lea.hbm %s933_s6, 24  ;;  %p939_p8 = scmp.lt.s32.totalorder %s933_s6, %s1194_s3 }
  0x35   : > { %p935_p1 = scmp.ne.s32.totalorder %s933_s6, %s934_s7  ;;  %p940_p12 = scmp.lt.s32.totalorder %s938_s9, %s934_s7 }
  0x36   : > { %460 = vmatpush.bf16.msra.mxu2 %v711_v30  ;;  %716 = vmatpush.bf16.msra.mxu3 %v711_v30 }
  0x37   : > { %318 = vmatpush.bf16.msra.mxu0 %v629_v22  ;;  %p936_p2 = pnand %p935_p1, %p1116_p7  ;;  %p941_p13 = por %p940_p12, %p939_p8 }
  0x38   : > { %336 = vmatpush.bf16.msra.mxu1 %v633_v23 }
  0x39   : > { %p937_p4 = pneg %p936_p2 }
  0x3a   : > { %658 = vmatmul.msk.bf16.vlgmr.msra.gmra.mxu0 %vm304_vm0, %v697_v24  ;;  %461 = vmatpush.bf16.msra.mxu2 %v710_v31 }
  0x3b   : > { %660 = vmatmul.msk.bf16.vlgmr.msra.gmra.mxu1 %vm304_vm0, %v697_v24  ;;  %717 = vmatpush.bf16.msra.mxu3 %v710_v31  ;;  %p942_p0 = pnand %p941_p13, %p937_p4 }
  0x3e   : > { %462 = vmatpush.bf16.msra.mxu2 %v709_v32 }
  0x3f   : > { %718 = vmatpush.bf16.msra.mxu3 %v709_v32 }
  0x42   : > { %463 = vmatpush.bf16.msra.mxu2 %v708_v33 }
  0x43   : > { %719 = vmatpush.bf16.msra.mxu3 %v708_v33 }
  0x46   : > { %464 = vmatpush.bf16.msra.mxu2 %v707_v34 }
  0x47   : > { %720 = vmatpush.bf16.msra.mxu3 %v707_v34 }
  0x4a   : > { %659 = vmatmul.msk.bf16.gmra.mxu0 %vm304_vm0, %v263_v27  ;;  %465 = vmatpush.bf16.msra.mxu2 %v706_v35 }
  0x4b   : > { %661 = vmatmul.msk.bf16.gmra.mxu1 %vm304_vm0, %v263_v27  ;;  %721 = vmatpush.bf16.msra.mxu3 %v706_v35 }
  0xb7   : > { %v320_v36 = vpop.f32.mrf.mxu0 }
  0xb8   : > { %v347_v37 = vmul.f32 %v320_v36, %v320_v36  ;;  %v338_v38 = vpop.f32.mrf.mxu1 }
  0xb9   : > { %v350_v39 = vmul.f32 %v338_v38, %v338_v38 }
  0xbb   : > { %v353_v40 = vadd.f32 %v350_v39, %v347_v37 }
  0xbd   : > { %816 = vrsqrt.f32 %v353_v40  ;;  %vm363_vm1 = vcmp.eq.f32.partialorder %v353_v40, inf  ;;  %v366_v7 = vand.u32 2147483648, %v353_v40  ;;  %vm365_vm3 = vcmp.eq.f32.partialorder %v353_v40, 0.0 }
  0xbf   : > { %v322_v41 = vpop.f32.mrf.mxu0 }
  0xc0   : > { %v348_v42 = vmul.f32 %v322_v41, %v322_v41  ;;  %v340_v43 = vpop.f32.mrf.mxu1 }
  0xc1   : > { %v351_v44 = vmul.f32 %v340_v43, %v340_v43 }
  0xc3   : > { %v817_v45 = vpop.eup %816  ;;  %v354_v46 = vadd.f32 %v351_v44, %v348_v42 }
  0xc4   : > { %v357_v47 = vmul.f32 %v817_v45, %v353_v40 }
  0xc5   : > { %818 = vrsqrt.f32 %v354_v46  ;;  %vm375_vm2 = vcmp.eq.f32.partialorder %v354_v46, inf  ;;  %v378_v8 = vand.u32 2147483648, %v354_v46  ;;  %vm377_vm4 = vcmp.eq.f32.partialorder %v354_v46, 0.0 }
  0xc6   : > { %v358_v48 = vmul.f32 %v817_v45, %v357_v47 }
  0xc7   : > { %v325_v49 = vpop.f32.mrf.mxu0 }
  0xc8   : > { %v349_v50 = vmul.f32 %v325_v49, %v325_v49  ;;  %v343_v51 = vpop.f32.mrf.mxu1  ;;  %v359_v52 = vmul.f32 0.5, %v358_v48 }
  0xc9   : > { %v352_v53 = vmul.f32 %v343_v51, %v343_v51 }
  0xca   : > { %v360_v54 = vsub.f32 1.5, %v359_v52 }
  0xcb   : > { %v819_v55 = vpop.eup %818  ;;  %v355_v56 = vadd.f32 %v352_v53, %v349_v50 }
  0xcc   : > { %v369_v57 = vmul.f32 %v819_v55, %v354_v46  ;;  %v361_v58 = vmul.f32 %v817_v45, %v360_v54 }
  0xcd   : > { %820 = vrsqrt.f32 %v355_v56  ;;  %vm387_vm5 = vcmp.eq.f32.partialorder %v355_v56, inf  ;;  %v390_v17 = vand.u32 2147483648, %v355_v56  ;;  %vm389_vm6 = vcmp.eq.f32.partialorder %v355_v56, 0.0 }
  0xce   : > { %v370_v59 = vmul.f32 %v819_v55, %v369_v57  ;;  %v362_v63 = vmul.f32 %v361_v58, %v353_v40 }
  0xcf   : > { %v327_v60 = vpop.f32.mrf.mxu0 }
  0xd0   : > { %v345_v61 = vpop.f32.mrf.mxu1  ;;  %v371_v62 = vmul.f32 0.5, %v370_v59  ;;  %v364_v4 = vsel %vm363_vm1, %v353_v40, %v362_v63 }
  0xd1   : > { %v367_v11 = vsel %vm365_vm3, %v366_v7, %v364_v4 }
  0xd2   : > { %v372_v0 = vsub.f32 1.5, %v371_v62 }
  0xd3   : > { %v821_v1 = vpop.eup %820 }
  0xd4   : > { %v373_v2 = vmul.f32 %v819_v55, %v372_v0  ;;  %v381_v3 = vmul.f32 %v821_v1, %v355_v56 }
  0xd6   : > { %v374_v5 = vmul.f32 %v373_v2, %v354_v46  ;;  %v382_v6 = vmul.f32 %v821_v1, %v381_v3 }
  0xd8   : > { %v376_v9 = vsel %vm375_vm2, %v354_v46, %v374_v5  ;;  %v383_v10 = vmul.f32 0.5, %v382_v6 }
  0xd9   : > { %v379_v12 = vsel %vm377_vm4, %v378_v8, %v376_v9 }
  0xda   : > { %v392_v13 = vpack.c.bf16 %v379_v12, %v367_v11  ;;  %v384_v14 = vsub.f32 1.5, %v383_v10 }
  0xdc   : > { %466 = vmatmul.bf16.vlgmr.msra.gmra.mxu2 %v392_v13  ;;  %v385_v15 = vmul.f32 %v821_v1, %v384_v14 }
  0xde   : > { %v386_v16 = vmul.f32 %v385_v15, %v355_v56 }
  0xe0   : > { %v388_v18 = vsel %vm387_vm5, %v355_v56, %v386_v16 }
  0xe1   : > { %v391_v19 = vsel %vm389_vm6, %v390_v17, %v388_v18 }
  0xe2   : > { %v393_v20 = vpack.c.bf16 %v391_v19, %v391_v19 }
  0xe4   : > { %471 = vmatmul.bf16.vlgmr.msra.gmra.mxu3 %v393_v20 }
 0x15f   : > { %v467_v21 = vpop.f32.mrf.mxu2 }
 0x160   : > { %v476_v22 = vmax.f32 %v467_v21, 1e-05 }
 0x162   : > { %822 = vlog2.f32 %v476_v22 }
 0x167   : > { %v469_v23 = vpop.f32.mrf.mxu2  ;;  %v472_v24 = vpop.f32.mrf.mxu3 }
 0x168   : > { %v823_v25 = vpop.eup %822  ;;  %v477_v26 = vmax.f32 %v469_v23, 1e-05  ;;  %v478_v27 = vmax.f32 %v472_v24, 1e-05 }
 0x169   : > { %v480_v28 = vmul.f32 0.6931472, %v823_v25 }
 0x16a   : > { %824 = vlog2.f32 %v477_v26 }
 0x16b   : > { %485 = vst [vmem:[%s241_s27] sm:$0xff] %v480_v28  ;;  %826 = vlog2.f32 %v478_v27 }
 0x16f   : > { %v474_v29 = vpop.f32.mrf.mxu3 }
 0x170   : > { %v825_v30 = vpop.eup %824 }
 0x171   : > { %v827_v31 = vpop.eup %826  ;;  %v482_v32 = vmul.f32 0.6931472, %v825_v30 }
 0x172   : > { %v484_v33 = vmul.f32 0.6931472, %v827_v31 }
 0x173   : > { %486 = vst [vmem:[%s241_s27 + $0x8] sm:$0xff] %v482_v32 }
 0x174   : > { %487 = vst [vmem:[%s241_s27 + $0x10] sm:$0xff] %v484_v33 }
 0x175   : > { %945 = shalt.err (!%p942_p0)
}
 0x176   : > { %s1012_s19 = smov 128   ;;  %s1013_s30 = smov 8  }
 0x177   : > { %737 = dma.vmem_to_hbm [thread:$0]  (%p1116_p7), %s504_s4, 384, %s506_s5, %s489_s15, %s1012_s19, %s1012_s19, %s1013_s30  }
 0x178 PF: > { %s520_s20 = sand.u32 1, %s984_s12   ;;  %p751_p3 = pnand %p617_p11, %p1083_p6 }
 0x179   : > { %s521_s22 = scalar_lea.sflag [#allocation4], %s520_s20 }
 0x17a   : > { %p752_p5 = pneg %p751_p3 }
 0x17c   : > { %979 = dma.done.wait (%p752_p5), %s521_s22, 384  }
 0x17d   : > { %981 = vsyncadd (%p752_p5), %s521_s22, 4294966912  ;;  %s20_s17 = sadd.s32 1, %s1004_s17   ;;  %s1201_s12 = smov %s988_s13 }
 0x17e   : > { %p17_p9 = scmp.ge.s32.totalorder %s20_s17, 4   ;;  %s1202_s13 = smov %s992_s14 }
 0x17f   : > { %s1203_s14 = smov %s1124_s29  ;;  %s1204_s15 = smov %s1000_s16 }
 0x180   : > { %s1205_s16 = smov %s1207_s18  ;;  %19 = sbr.rel (!%p17_p9) target bundleno = 7 (0x7), region = 85 }
 0x185   :  { %527 = vsyncpa [#allocation3], 1 }
 0x186   :  { %529 = vsyncpa [#allocation3 + $0x1], 1 }
 0x187   :  { %530 = vsyncpa [#allocation6], 1 }
 0x188   :  { %531 = vsyncpa [#allocation4], 1 }
 0x189   :  { %533 = vsyncpa [#allocation4 + $0x1], 1 }

</bundles_post_ra>
